<compile_context>
chip_gen: v6e
topology: v6e:2x2x1
jax: 0.10.0
libtpu: 0.0.40
codegen_flags: <defaults>
</compile_context>

<pallas_src>
import jax
import jax.numpy as jnp
from jax.experimental import pallas as pl
from jax.experimental.pallas import tpu as pltpu

# ---- model configuration -----------------------------------------------------
# input length chosen so the flattened feature count == `size` == 128,
# matching nn.Linear(self.size, 128) in the PyTorch module.
B = 2
L_IN = 44
C1, K1 = 6, 5           # conv1: Conv1d(1, 6, 5)
C2, K2 = 16, 5          # conv2: Conv1d(6, 16, 5)
L1 = L_IN - K1 + 1      # 40   (conv1 output length)
P1 = L1 // 2            # 20   (after pool)
L2 = P1 - K2 + 1        # 16   (conv2 output length)
P2 = L2 // 2            # 8    (after pool)
SIZE = C2 * P2          # 128  == self.size
H1 = 128                # linear1 out features
NOUT = 2                # linear_out out features
LANES = 128
# NOTE: self.linear2 = nn.Linear(128, 64) exists in __init__ but is never used
# in forward(); it is intentionally omitted here.

# Packed-constant row offsets (every section starts on an 8-row boundary,
# every section padded to 128 lanes).
ROW_W1 = 0        # (K1, C1)
ROW_B1 = 8        # (1, C1)
ROW_W2 = 16       # (K2*C1, C2)
ROW_B2 = 48       # (1, C2)
ROW_WL1 = 56      # (SIZE, H1)
ROW_BL1 = 184     # (1, H1)
ROW_WO = 192      # (H1, LANES)  -- cols >= NOUT are zero
ROW_BO = 320      # (1, LANES)
PACK_ROWS = 328


def mycnn_kernel(x_ref, w_ref, out_ref):
    f32 = jnp.float32
    x = x_ref[...]                                            # (B*L_IN, 1)

    # ---- conv1 (valid, stride 1): im2col + one MXU matmul for the whole batch
    # IM1[b*L1 + p, k] = x[b*L_IN + p + k]
    cols = []
    for k in range(K1):
        cols.append(jnp.concatenate(
            [x[b * L_IN + k: b * L_IN + k + L1, :] for b in range(B)], axis=0))
    im1 = jnp.concatenate(cols, axis=1)                       # (B*L1, K1)
    w1 = w_ref[pl.ds(ROW_W1, K1), pl.ds(0, C1)]               # (K1, C1)
    b1 = w_ref[pl.ds(ROW_B1, 1), pl.ds(0, C1)]                # (1, C1)
    a1 = jnp.dot(im1, w1, preferred_element_type=f32) + b1    # (B*L1, C1)

    # ---- maxpool1 + ReLU: in-kernel iota selector, one matmul, max of halves.
    # (L1 == 2*P1, so with batch stacked the even/odd source row is simply 2r / 2r+1.)
    n1 = B * P1
    ri = jax.lax.broadcasted_iota(jnp.int32, (2 * n1, B * L1), 0)
    ci = jax.lax.broadcasted_iota(jnp.int32, (2 * n1, B * L1), 1)
    tgt = jnp.where(ri < n1, 2 * ri, 2 * (ri - n1) + 1)
    s1 = jnp.where(ci == tgt, 1.0, 0.0).astype(f32)           # (2*n1, B*L1)
    r1 = jnp.dot(s1, a1, preferred_element_type=f32)          # (2*n1, C1)
    p1 = jnp.maximum(jnp.maximum(r1[:n1, :], r1[n1:, :]), 0.0)   # (B*P1, C1)

    # ---- conv2: im2col + one matmul
    # IM2[b*L2 + p, k*C1 + c] = p1[b*P1 + p + k, c]
    rows = []
    for b in range(B):
        rows.append(jnp.concatenate(
            [p1[b * P1 + k: b * P1 + k + L2, :] for k in range(K2)], axis=1))
    im2 = jnp.concatenate(rows, axis=0)                       # (B*L2, K2*C1)
    w2 = w_ref[pl.ds(ROW_W2, K2 * C1), pl.ds(0, C2)]          # (K2*C1, C2)
    b2 = w_ref[pl.ds(ROW_B2, 1), pl.ds(0, C2)]                # (1, C2)
    a2 = jnp.dot(im2, w2, preferred_element_type=f32) + b2    # (B*L2, C2)

    # ---- maxpool2 + ReLU
    n2 = B * P2
    ri2 = jax.lax.broadcasted_iota(jnp.int32, (2 * n2, B * L2), 0)
    ci2 = jax.lax.broadcasted_iota(jnp.int32, (2 * n2, B * L2), 1)
    tgt2 = jnp.where(ri2 < n2, 2 * ri2, 2 * (ri2 - n2) + 1)
    s2 = jnp.where(ci2 == tgt2, 1.0, 0.0).astype(f32)         # (2*n2, B*L2)
    r2 = jnp.dot(s2, a2, preferred_element_type=f32)          # (2*n2, C2)
    p2 = jnp.maximum(jnp.maximum(r2[:n2, :], r2[n2:, :]), 0.0)   # (B*P2, C2)

    # ---- flatten to (B, SIZE) by lane-concatenation of the P2 per-sample rows.
    # (PyTorch's view(-1, size) channel-major order is folded into wl1's row order.)
    feat = jnp.concatenate(
        [jnp.concatenate([p2[b * P2 + l: b * P2 + l + 1, :] for l in range(P2)],
                         axis=1)
         for b in range(B)], axis=0)                          # (B, SIZE)

    # ---- linear1 + ReLU: single (B,128)@(128,128) matmul
    wl1 = w_ref[pl.ds(ROW_WL1, SIZE), :]                      # (SIZE, H1)
    bl1 = w_ref[pl.ds(ROW_BL1, 1), :]                         # (1, H1)
    h = jnp.maximum(jnp.dot(feat, wl1, preferred_element_type=f32) + bl1, 0.0)

    # ---- linear_out, lane-dense (cols >= NOUT are exact zeros by construction)
    wo = w_ref[pl.ds(ROW_WO, H1), :]                          # (H1, LANES)
    bo = w_ref[pl.ds(ROW_BO, 1), :]                           # (1, LANES)
    out_ref[...] = jnp.dot(h, wo, preferred_element_type=f32) + bo   # (B, LANES)


def prepare_params(params):
    """One-time (init-time) repack of PyTorch-shaped params into a single
    lane-dense (PACK_ROWS, 128) f32 constant block.  Call ONCE, not per forward."""
    w1, b1, w2, b2, W1, bl1, Wo, bo = params

    w1_k = jnp.transpose(w1[:, 0, :], (1, 0))                           # (K1, C1)
    w2_k = jnp.transpose(w2, (2, 1, 0)).reshape(K2 * C1, C2)            # (K2*C1, C2)
    # fold PyTorch flatten order f = c*P2 + l into kernel row order g = l*C2 + c
    wl1_k = (jnp.transpose(W1, (1, 0))
             .reshape(C2, P2, H1).transpose(1, 0, 2).reshape(SIZE, H1))  # (SIZE, H1)
    wo_k = jnp.transpose(Wo, (1, 0))                                    # (H1, NOUT)

    def pad(a, rows):
        a = jnp.asarray(a, jnp.float32)
        return jnp.pad(a, ((0, rows - a.shape[0]), (0, LANES - a.shape[1])))

    pack = jnp.concatenate([
        pad(w1_k, ROW_B1 - ROW_W1),
        pad(b1.reshape(1, C1), ROW_W2 - ROW_B1),
        pad(w2_k, ROW_B2 - ROW_W2),
        pad(b2.reshape(1, C2), ROW_WL1 - ROW_B2),
        pad(wl1_k, ROW_BL1 - ROW_WL1),
        pad(bl1.reshape(1, H1), ROW_WO - ROW_BL1),
        pad(wo_k, ROW_BO - ROW_WO),
        pad(bo.reshape(1, NOUT), PACK_ROWS - ROW_BO),
    ], axis=0)
    assert pack.shape == (PACK_ROWS, LANES)
    return pack


@jax.jit
def mycnn_forward(x_ncl, pack):
    """x_ncl: (B, 1, L_IN) float32 (PyTorch NCL).  pack: prepare_params(...).
    Returns (B, NOUT)."""
    x_flat = jnp.asarray(x_ncl, jnp.float32).reshape(B * L_IN, 1)  # free reshape
    out = pl.pallas_call(
        mycnn_kernel,
        out_shape=jax.ShapeDtypeStruct((B, LANES), jnp.float32),
        grid=(1,),
        in_specs=[
            pl.BlockSpec((B * L_IN, 1), lambda i: (0, 0)),       # x (whole batch)
            pl.BlockSpec((PACK_ROWS, LANES), lambda i: (0, 0)),  # packed constants
        ],
        out_specs=pl.BlockSpec((B, LANES), lambda i: (0, 0)),
        compiler_params=pltpu.CompilerParams(dimension_semantics=("arbitrary",)),
    )(x_flat, pack)
    return out[:, :NOUT]


def reference(x_ncl, params):
    """Pure-JAX mirror of the PyTorch forward (NCL layout), for verification."""
    w1, b1, w2, b2, W1, bl1, Wo, bo = params

    def conv1d(x, w, b):
        K = w.shape[2]
        Lout = x.shape[2] - K + 1
        out = b[None, :, None]
        for k in range(K):
            out = out + jnp.einsum('bcl,oc->bol', x[:, :, k:k + Lout], w[:, :, k])
        return out

    def pool(x):
        Bx, C, L = x.shape
        return x.reshape(Bx, C, L // 2, 2).max(axis=-1)

    h = pool(jax.nn.relu(conv1d(x_ncl, w1, b1)))
    h = pool(jax.nn.relu(conv1d(h, w2, b2)))
    h = h.reshape(h.shape[0], -1)                     # == view(-1, size)
    h = jax.nn.relu(h @ W1.T + bl1)
    return h @ Wo.T + bo


if __name__ == "__main__":
    key = jax.random.PRNGKey(0)
    ks = jax.random.split(key, 9)
    x = jax.random.normal(ks[0], (B, 1, L_IN), jnp.float32)
    w1 = 0.1 * jax.random.normal(ks[1], (C1, 1, K1), jnp.float32)
    b1 = 0.1 * jax.random.normal(ks[2], (C1,), jnp.float32)
    w2 = 0.1 * jax.random.normal(ks[3], (C2, C1, K2), jnp.float32)
    b2 = 0.1 * jax.random.normal(ks[4], (C2,), jnp.float32)
    W1 = 0.1 * jax.random.normal(ks[5], (H1, SIZE), jnp.float32)
    bl1 = 0.1 * jax.random.normal(ks[6], (H1,), jnp.float32)
    Wo = 0.1 * jax.random.normal(ks[7], (NOUT, H1), jnp.float32)
    bo = 0.1 * jax.random.normal(ks[8], (NOUT,), jnp.float32)
    params = (w1, b1, w2, b2, W1, bl1, Wo, bo)

    pack = jax.block_until_ready(prepare_params(params))   # init-time, run once
    out = jax.block_until_ready(mycnn_forward(x, pack))
    ref = jax.block_until_ready(reference(x, params))
    assert out.shape == (B, NOUT), out.shape
    if not jnp.allclose(out, ref, atol=1e-2, rtol=1e-2):
        raise AssertionError(f"mismatch: max abs err {jnp.max(jnp.abs(out - ref))}")
    print("KERNEL_OK")
</pallas_src>

<mosaic_0001>
module attributes {stable_mosaic.version = 11 : i64} {
  func.func @mycnn_kernel(%arg0: i32, %arg1: memref<88x1xf32, #tpu.memory_space<vmem>>, %arg2: memref<328x128xf32, #tpu.memory_space<vmem>>, %arg3: memref<2x128xf32, #tpu.memory_space<vmem>>) attributes {dimension_semantics = [#tpu.dimension_semantics<arbitrary>], iteration_bounds = array<i64: 1>, scalar_prefetch = 0 : i64, scratch_operands = 0 : i64, tpu.core_type = #tpu.core_type<tc>, window_params = [{pipeline_mode = #tpu.pipeline_mode<synchronous>, transform_indices = @transform_0, window_bounds = array<i64: 88, 1>}, {pipeline_mode = #tpu.pipeline_mode<synchronous>, transform_indices = @transform_1, window_bounds = array<i64: 328, 128>}, {pipeline_mode = #tpu.pipeline_mode<synchronous>, transform_indices = @transform_2, window_bounds = array<i64: 2, 128>}]} {
    %c0 = arith.constant 0 : index
    %c0_0 = arith.constant 0 : index
    %0 = vector.load %arg1[%c0, %c0_0] : memref<88x1xf32, #tpu.memory_space<vmem>>, vector<88x1xf32>
    %1 = vector.extract_strided_slice %0 {offsets = [0, 0], sizes = [40, 1], strides = [1, 1]} : vector<88x1xf32> to vector<40x1xf32>
    %2 = vector.extract_strided_slice %0 {offsets = [44, 0], sizes = [40, 1], strides = [1, 1]} : vector<88x1xf32> to vector<40x1xf32>
    %3 = tpu.concatenate %1, %2 in 0 : vector<40x1xf32>, vector<40x1xf32> -> vector<80x1xf32>
    %4 = vector.extract_strided_slice %0 {offsets = [1, 0], sizes = [40, 1], strides = [1, 1]} : vector<88x1xf32> to vector<40x1xf32>
    %5 = vector.extract_strided_slice %0 {offsets = [45, 0], sizes = [40, 1], strides = [1, 1]} : vector<88x1xf32> to vector<40x1xf32>
    %6 = tpu.concatenate %4, %5 in 0 : vector<40x1xf32>, vector<40x1xf32> -> vector<80x1xf32>
    %7 = vector.extract_strided_slice %0 {offsets = [2, 0], sizes = [40, 1], strides = [1, 1]} : vector<88x1xf32> to vector<40x1xf32>
    %8 = vector.extract_strided_slice %0 {offsets = [46, 0], sizes = [40, 1], strides = [1, 1]} : vector<88x1xf32> to vector<40x1xf32>
    %9 = tpu.concatenate %7, %8 in 0 : vector<40x1xf32>, vector<40x1xf32> -> vector<80x1xf32>
    %10 = vector.extract_strided_slice %0 {offsets = [3, 0], sizes = [40, 1], strides = [1, 1]} : vector<88x1xf32> to vector<40x1xf32>
    %11 = vector.extract_strided_slice %0 {offsets = [47, 0], sizes = [40, 1], strides = [1, 1]} : vector<88x1xf32> to vector<40x1xf32>
    %12 = tpu.concatenate %10, %11 in 0 : vector<40x1xf32>, vector<40x1xf32> -> vector<80x1xf32>
    %13 = vector.extract_strided_slice %0 {offsets = [4, 0], sizes = [40, 1], strides = [1, 1]} : vector<88x1xf32> to vector<40x1xf32>
    %14 = vector.extract_strided_slice %0 {offsets = [48, 0], sizes = [40, 1], strides = [1, 1]} : vector<88x1xf32> to vector<40x1xf32>
    %15 = tpu.concatenate %13, %14 in 0 : vector<40x1xf32>, vector<40x1xf32> -> vector<80x1xf32>
    %16 = tpu.concatenate %3, %6, %9, %12, %15 in 1 : vector<80x1xf32>, vector<80x1xf32>, vector<80x1xf32>, vector<80x1xf32>, vector<80x1xf32> -> vector<80x5xf32>
    %c0_1 = arith.constant 0 : index
    %c0_2 = arith.constant 0 : index
    %17 = vector.load %arg2[%c0_1, %c0_2] : memref<328x128xf32, #tpu.memory_space<vmem>>, vector<5x6xf32>
    %c8 = arith.constant 8 : index
    %c0_3 = arith.constant 0 : index
    %18 = vector.load %arg2[%c8, %c0_3] : memref<328x128xf32, #tpu.memory_space<vmem>>, vector<1x6xf32>
    %cst = arith.constant dense<0.000000e+00> : vector<80x6xf32>
    %19 = tpu.matmul %16, %17, %cst {dimension_numbers = #tpu.dot_dimension_numbers<[1], [0], [0], [1], [0, 0, 1, 1], [], []>} : vector<80x5xf32>, vector<5x6xf32>, vector<80x6xf32> -> vector<80x6xf32>
    %20 = vector.broadcast %18 : vector<1x6xf32> to vector<80x6xf32>
    %21 = arith.addf %19, %20 : vector<80x6xf32>
    %22 = tpu.iota {dimensions = array<i32: 0>} : vector<80x80xi32>
    %23 = tpu.iota {dimensions = array<i32: 1>} : vector<80x80xi32>
    %c40_i32 = arith.constant 40 : i32
    %24 = vector.broadcast %c40_i32 : i32 to vector<80x80xi32>
    %25 = arith.cmpi slt, %22, %24 : vector<80x80xi32>
    %c2_i32 = arith.constant 2 : i32
    %26 = vector.broadcast %c2_i32 : i32 to vector<80x80xi32>
    %27 = arith.muli %26, %22 : vector<80x80xi32>
    %c40_i32_4 = arith.constant 40 : i32
    %28 = vector.broadcast %c40_i32_4 : i32 to vector<80x80xi32>
    %29 = arith.subi %22, %28 : vector<80x80xi32>
    %c2_i32_5 = arith.constant 2 : i32
    %30 = vector.broadcast %c2_i32_5 : i32 to vector<80x80xi32>
    %31 = arith.muli %30, %29 : vector<80x80xi32>
    %c1_i32 = arith.constant 1 : i32
    %32 = vector.broadcast %c1_i32 : i32 to vector<80x80xi32>
    %33 = arith.addi %31, %32 : vector<80x80xi32>
    %34 = arith.select %25, %27, %33 : vector<80x80xi1>, vector<80x80xi32>
    %35 = arith.cmpi eq, %23, %34 : vector<80x80xi32>
    %cst_6 = arith.constant 1.000000e+00 : f32
    %cst_7 = arith.constant 0.000000e+00 : f32
    %36 = vector.broadcast %cst_6 : f32 to vector<80x80xf32>
    %37 = vector.broadcast %cst_7 : f32 to vector<80x80xf32>
    %38 = arith.select %35, %36, %37 : vector<80x80xi1>, vector<80x80xf32>
    %cst_8 = arith.constant dense<0.000000e+00> : vector<80x6xf32>
    %39 = tpu.matmul %38, %21, %cst_8 {dimension_numbers = #tpu.dot_dimension_numbers<[1], [0], [0], [1], [0, 0, 1, 1], [], []>} : vector<80x80xf32>, vector<80x6xf32>, vector<80x6xf32> -> vector<80x6xf32>
    %40 = vector.extract_strided_slice %39 {offsets = [0, 0], sizes = [40, 6], strides = [1, 1]} : vector<80x6xf32> to vector<40x6xf32>
    %41 = vector.extract_strided_slice %39 {offsets = [40, 0], sizes = [40, 6], strides = [1, 1]} : vector<80x6xf32> to vector<40x6xf32>
    %42 = arith.maximumf %40, %41 : vector<40x6xf32>
    %cst_9 = arith.constant 0.000000e+00 : f32
    %43 = vector.broadcast %cst_9 : f32 to vector<40x6xf32>
    %44 = arith.maximumf %42, %43 : vector<40x6xf32>
    %45 = vector.extract_strided_slice %44 {offsets = [0, 0], sizes = [16, 6], strides = [1, 1]} : vector<40x6xf32> to vector<16x6xf32>
    %46 = vector.extract_strided_slice %44 {offsets = [1, 0], sizes = [16, 6], strides = [1, 1]} : vector<40x6xf32> to vector<16x6xf32>
    %47 = vector.extract_strided_slice %44 {offsets = [2, 0], sizes = [16, 6], strides = [1, 1]} : vector<40x6xf32> to vector<16x6xf32>
    %48 = vector.extract_strided_slice %44 {offsets = [3, 0], sizes = [16, 6], strides = [1, 1]} : vector<40x6xf32> to vector<16x6xf32>
    %49 = vector.extract_strided_slice %44 {offsets = [4, 0], sizes = [16, 6], strides = [1, 1]} : vector<40x6xf32> to vector<16x6xf32>
    %50 = tpu.concatenate %45, %46, %47, %48, %49 in 1 : vector<16x6xf32>, vector<16x6xf32>, vector<16x6xf32>, vector<16x6xf32>, vector<16x6xf32> -> vector<16x30xf32>
    %51 = vector.extract_strided_slice %44 {offsets = [20, 0], sizes = [16, 6], strides = [1, 1]} : vector<40x6xf32> to vector<16x6xf32>
    %52 = vector.extract_strided_slice %44 {offsets = [21, 0], sizes = [16, 6], strides = [1, 1]} : vector<40x6xf32> to vector<16x6xf32>
    %53 = vector.extract_strided_slice %44 {offsets = [22, 0], sizes = [16, 6], strides = [1, 1]} : vector<40x6xf32> to vector<16x6xf32>
    %54 = vector.extract_strided_slice %44 {offsets = [23, 0], sizes = [16, 6], strides = [1, 1]} : vector<40x6xf32> to vector<16x6xf32>
    %55 = vector.extract_strided_slice %44 {offsets = [24, 0], sizes = [16, 6], strides = [1, 1]} : vector<40x6xf32> to vector<16x6xf32>
    %56 = tpu.concatenate %51, %52, %53, %54, %55 in 1 : vector<16x6xf32>, vector<16x6xf32>, vector<16x6xf32>, vector<16x6xf32>, vector<16x6xf32> -> vector<16x30xf32>
    %57 = tpu.concatenate %50, %56 in 0 : vector<16x30xf32>, vector<16x30xf32> -> vector<32x30xf32>
    %c16 = arith.constant 16 : index
    %c0_10 = arith.constant 0 : index
    %58 = vector.load %arg2[%c16, %c0_10] : memref<328x128xf32, #tpu.memory_space<vmem>>, vector<30x16xf32>
    %c48 = arith.constant 48 : index
    %c0_11 = arith.constant 0 : index
    %59 = vector.load %arg2[%c48, %c0_11] : memref<328x128xf32, #tpu.memory_space<vmem>>, vector<1x16xf32>
    %cst_12 = arith.constant dense<0.000000e+00> : vector<32x16xf32>
    %60 = tpu.matmul %57, %58, %cst_12 {dimension_numbers = #tpu.dot_dimension_numbers<[1], [0], [0], [1], [0, 0, 1, 1], [], []>} : vector<32x30xf32>, vector<30x16xf32>, vector<32x16xf32> -> vector<32x16xf32>
    %61 = vector.broadcast %59 : vector<1x16xf32> to vector<32x16xf32>
    %62 = arith.addf %60, %61 : vector<32x16xf32>
    %63 = tpu.iota {dimensions = array<i32: 0>} : vector<32x32xi32>
    %64 = tpu.iota {dimensions = array<i32: 1>} : vector<32x32xi32>
    %c16_i32 = arith.constant 16 : i32
    %65 = vector.broadcast %c16_i32 : i32 to vector<32x32xi32>
    %66 = arith.cmpi slt, %63, %65 : vector<32x32xi32>
    %c2_i32_13 = arith.constant 2 : i32
    %67 = vector.broadcast %c2_i32_13 : i32 to vector<32x32xi32>
    %68 = arith.muli %67, %63 : vector<32x32xi32>
    %c16_i32_14 = arith.constant 16 : i32
    %69 = vector.broadcast %c16_i32_14 : i32 to vector<32x32xi32>
    %70 = arith.subi %63, %69 : vector<32x32xi32>
    %c2_i32_15 = arith.constant 2 : i32
    %71 = vector.broadcast %c2_i32_15 : i32 to vector<32x32xi32>
    %72 = arith.muli %71, %70 : vector<32x32xi32>
    %c1_i32_16 = arith.constant 1 : i32
    %73 = vector.broadcast %c1_i32_16 : i32 to vector<32x32xi32>
    %74 = arith.addi %72, %73 : vector<32x32xi32>
    %75 = arith.select %66, %68, %74 : vector<32x32xi1>, vector<32x32xi32>
    %76 = arith.cmpi eq, %64, %75 : vector<32x32xi32>
    %cst_17 = arith.constant 1.000000e+00 : f32
    %cst_18 = arith.constant 0.000000e+00 : f32
    %77 = vector.broadcast %cst_17 : f32 to vector<32x32xf32>
    %78 = vector.broadcast %cst_18 : f32 to vector<32x32xf32>
    %79 = arith.select %76, %77, %78 : vector<32x32xi1>, vector<32x32xf32>
    %cst_19 = arith.constant dense<0.000000e+00> : vector<32x16xf32>
    %80 = tpu.matmul %79, %62, %cst_19 {dimension_numbers = #tpu.dot_dimension_numbers<[1], [0], [0], [1], [0, 0, 1, 1], [], []>} : vector<32x32xf32>, vector<32x16xf32>, vector<32x16xf32> -> vector<32x16xf32>
    %81 = vector.extract_strided_slice %80 {offsets = [0, 0], sizes = [16, 16], strides = [1, 1]} : vector<32x16xf32> to vector<16x16xf32>
    %82 = vector.extract_strided_slice %80 {offsets = [16, 0], sizes = [16, 16], strides = [1, 1]} : vector<32x16xf32> to vector<16x16xf32>
    %83 = arith.maximumf %81, %82 : vector<16x16xf32>
    %cst_20 = arith.constant 0.000000e+00 : f32
    %84 = vector.broadcast %cst_20 : f32 to vector<16x16xf32>
    %85 = arith.maximumf %83, %84 : vector<16x16xf32>
    %86 = vector.extract_strided_slice %85 {offsets = [0, 0], sizes = [1, 16], strides = [1, 1]} : vector<16x16xf32> to vector<1x16xf32>
    %87 = vector.extract_strided_slice %85 {offsets = [1, 0], sizes = [1, 16], strides = [1, 1]} : vector<16x16xf32> to vector<1x16xf32>
    %88 = vector.extract_strided_slice %85 {offsets = [2, 0], sizes = [1, 16], strides = [1, 1]} : vector<16x16xf32> to vector<1x16xf32>
    %89 = vector.extract_strided_slice %85 {offsets = [3, 0], sizes = [1, 16], strides = [1, 1]} : vector<16x16xf32> to vector<1x16xf32>
    %90 = vector.extract_strided_slice %85 {offsets = [4, 0], sizes = [1, 16], strides = [1, 1]} : vector<16x16xf32> to vector<1x16xf32>
    %91 = vector.extract_strided_slice %85 {offsets = [5, 0], sizes = [1, 16], strides = [1, 1]} : vector<16x16xf32> to vector<1x16xf32>
    %92 = vector.extract_strided_slice %85 {offsets = [6, 0], sizes = [1, 16], strides = [1, 1]} : vector<16x16xf32> to vector<1x16xf32>
    %93 = vector.extract_strided_slice %85 {offsets = [7, 0], sizes = [1, 16], strides = [1, 1]} : vector<16x16xf32> to vector<1x16xf32>
    %94 = tpu.concatenate %86, %87, %88, %89, %90, %91, %92, %93 in 1 : vector<1x16xf32>, vector<1x16xf32>, vector<1x16xf32>, vector<1x16xf32>, vector<1x16xf32>, vector<1x16xf32>, vector<1x16xf32>, vector<1x16xf32> -> vector<1x128xf32>
    %95 = vector.extract_strided_slice %85 {offsets = [8, 0], sizes = [1, 16], strides = [1, 1]} : vector<16x16xf32> to vector<1x16xf32>
    %96 = vector.extract_strided_slice %85 {offsets = [9, 0], sizes = [1, 16], strides = [1, 1]} : vector<16x16xf32> to vector<1x16xf32>
    %97 = vector.extract_strided_slice %85 {offsets = [10, 0], sizes = [1, 16], strides = [1, 1]} : vector<16x16xf32> to vector<1x16xf32>
    %98 = vector.extract_strided_slice %85 {offsets = [11, 0], sizes = [1, 16], strides = [1, 1]} : vector<16x16xf32> to vector<1x16xf32>
    %99 = vector.extract_strided_slice %85 {offsets = [12, 0], sizes = [1, 16], strides = [1, 1]} : vector<16x16xf32> to vector<1x16xf32>
    %100 = vector.extract_strided_slice %85 {offsets = [13, 0], sizes = [1, 16], strides = [1, 1]} : vector<16x16xf32> to vector<1x16xf32>
    %101 = vector.extract_strided_slice %85 {offsets = [14, 0], sizes = [1, 16], strides = [1, 1]} : vector<16x16xf32> to vector<1x16xf32>
    %102 = vector.extract_strided_slice %85 {offsets = [15, 0], sizes = [1, 16], strides = [1, 1]} : vector<16x16xf32> to vector<1x16xf32>
    %103 = tpu.concatenate %95, %96, %97, %98, %99, %100, %101, %102 in 1 : vector<1x16xf32>, vector<1x16xf32>, vector<1x16xf32>, vector<1x16xf32>, vector<1x16xf32>, vector<1x16xf32>, vector<1x16xf32>, vector<1x16xf32> -> vector<1x128xf32>
    %104 = tpu.concatenate %94, %103 in 0 : vector<1x128xf32>, vector<1x128xf32> -> vector<2x128xf32>
    %c56 = arith.constant 56 : index
    %c0_21 = arith.constant 0 : index
    %105 = vector.load %arg2[%c56, %c0_21] : memref<328x128xf32, #tpu.memory_space<vmem>>, vector<128x128xf32>
    %c184 = arith.constant 184 : index
    %c0_22 = arith.constant 0 : index
    %106 = vector.load %arg2[%c184, %c0_22] : memref<328x128xf32, #tpu.memory_space<vmem>>, vector<1x128xf32>
    %cst_23 = arith.constant dense<0.000000e+00> : vector<2x128xf32>
    %107 = tpu.matmul %104, %105, %cst_23 {dimension_numbers = #tpu.dot_dimension_numbers<[1], [0], [0], [1], [0, 0, 1, 1], [], []>} : vector<2x128xf32>, vector<128x128xf32>, vector<2x128xf32> -> vector<2x128xf32>
    %108 = vector.broadcast %106 : vector<1x128xf32> to vector<2x128xf32>
    %109 = arith.addf %107, %108 : vector<2x128xf32>
    %cst_24 = arith.constant 0.000000e+00 : f32
    %110 = vector.broadcast %cst_24 : f32 to vector<2x128xf32>
    %111 = arith.maximumf %109, %110 : vector<2x128xf32>
    %c192 = arith.constant 192 : index
    %c0_25 = arith.constant 0 : index
    %112 = vector.load %arg2[%c192, %c0_25] : memref<328x128xf32, #tpu.memory_space<vmem>>, vector<128x128xf32>
    %c320 = arith.constant 320 : index
    %c0_26 = arith.constant 0 : index
    %113 = vector.load %arg2[%c320, %c0_26] : memref<328x128xf32, #tpu.memory_space<vmem>>, vector<1x128xf32>
    %cst_27 = arith.constant dense<0.000000e+00> : vector<2x128xf32>
    %114 = tpu.matmul %111, %112, %cst_27 {dimension_numbers = #tpu.dot_dimension_numbers<[1], [0], [0], [1], [0, 0, 1, 1], [], []>} : vector<2x128xf32>, vector<128x128xf32>, vector<2x128xf32> -> vector<2x128xf32>
    %115 = vector.broadcast %113 : vector<1x128xf32> to vector<2x128xf32>
    %116 = arith.addf %114, %115 : vector<2x128xf32>
    %c0_28 = arith.constant 0 : index
    %c0_29 = arith.constant 0 : index
    %117 = vector.load %arg3[%c0_28, %c0_29] : memref<2x128xf32, #tpu.memory_space<vmem>>, vector<2x128xf32>
    tpu.vector_store %arg3[%c0_28, %c0_29], %116 {strides = array<i32>} : memref<2x128xf32, #tpu.memory_space<vmem>>, vector<2x128xf32>,
    return
  }
  func.func @transform_0(%arg0: i32) -> (i32, i32) {
    %c0_i32 = arith.constant 0 : i32
    %c0_i32_0 = arith.constant 0 : i32
    %c0_i32_1 = arith.constant 0 : i32
    return %c0_i32, %c0_i32_0 : i32, i32
  }
  func.func @transform_1(%arg0: i32) -> (i32, i32) {
    %c0_i32 = arith.constant 0 : i32
    %c0_i32_0 = arith.constant 0 : i32
    %c0_i32_1 = arith.constant 0 : i32
    return %c0_i32, %c0_i32_0 : i32, i32
  }
  func.func @transform_2(%arg0: i32) -> (i32, i32) {
    %c0_i32 = arith.constant 0 : i32
    %c0_i32_0 = arith.constant 0 : i32
    %c0_i32_1 = arith.constant 0 : i32
    return %c0_i32, %c0_i32_0 : i32, i32
  }
}

</mosaic_0001>

<bundles_post_ra>
// kernel: mycnn_forward.1
= control target key start
LH: loop header
LB: loop body
LE: loop exit
PB: predicated region body
PF: predicated region fallthrough
CT: control target
= control target key end

     0   :  { %7 = vsyncpa [#allocation3], 0  ;;  %s2229_s0 = inlined_call_operand.vmem [shape: f32[88,1], index: 0, kind: input, shape index: {}]   ;;  %s2230_s1 = inlined_call_operand.hbm [shape: f32[328,128], index: 1, kind: input, shape index: {}]   ;;  %s2231_s2 = inlined_call_operand.hbm [shape: f32[2,128], index: 2, kind: output, shape index: {}]  }
   0x1   :  { %8 = vsyncpa [#allocation4], 0  ;;  %s1732_s9 = smov [#allocation2]  }
   0x2   :  { %s16_s10 = sshll.u32 %s1732_s9, 4  ;;  %s17_s10 = int_to_ptr.vmem [resolvable:$true] %s16_s10 }
   0x3   :  { %s1696_s11 = scalar_lea.vmem %s17_s10, 5248  ;;  %p1701_p1 = scmp.lt.s32.totalorder %s17_s10, %s17_s10 }
   0x4   :  { %p1697_p0 = scmp.ne.s32.totalorder %s17_s10, %s1696_s11  ;;  %p1702_p2 = scmp.lt.s32.totalorder %s1696_s11, %s1696_s11 }
   0x6   :  { %p1703_p3 = por %p1702_p2, %p1701_p1 }
   0x8   :  { %p1704_p4 = pnand %p1703_p3, %p1697_p0 }
   0xa   :  { %1707 = shalt.err (!%p1704_p4)
}
   0xb   :  { %s1733_s12 = smov 128   ;;  %s1734_s13 = smov 8  }
   0xc   :  { %22 = dma.hbm_to_vmem [thread:$0]  %s2230_s1, 5248, %s17_s10, [#allocation3], %s1733_s12, %s1733_s12, %s1734_s13  }
   0xd   :  { %1728 = dma.done.wait [#allocation3], 5248  }
   0xe   :  { %1729 = vsyncadd [#allocation3], 4294962048  ;;  %v1774_v0 = vld [vmem:[%s2229_s0] sm:$0xff]  ;;  %v1779_v1 = vld [vmem:[%s2229_s0 + $0x8] sm:$0xff]  ;;  %vm89_vm0 = vcmask 1045504   ;;  %vm65_vm1 = vcmask 1046528  }
   0xf   :  { %v1784_v2 = vld [vmem:[%s2229_s0 + $0x10] sm:$0xff]  ;;  %v90_v3 = vrot.slane %v1774_v0, 2  ;;  %v91_v4 = vrot.slane %v1779_v1, 2  ;;  %v66_v5 = vrot.slane %v1774_v0, 1  ;;  %v67_v6 = vrot.slane %v1779_v1, 1  ;;  %s1735_s1 = smov 2  }
  0x10   :  { %v93_v7 = vrot.slane %v1784_v2, 2  ;;  %v69_v8 = vrot.slane %v1784_v2, 1  ;;  %s1736_s22 = smov 1   ;;  %vm113_vm2 = vcmask 1044480   ;;  %v115_v11 = vrot.slane %v1779_v1, 3  ;;  %v1804_v17 = vld [vmem:[%s2229_s0 + $0x18] sm:$0xff] }
  0x11   :  { %v92_v9 = vsel %vm89_vm0, %v90_v3, %v91_v4  ;;  %v68_v10 = vsel %vm65_vm1, %v66_v5, %v67_v6  ;;  %v311_v12 = vld [vmem:[#allocation2] sm:$0x1f]  ;;  %v117_v15 = vrot.slane %v1784_v2, 3  ;;  %v114_v16 = vrot.slane %v1774_v0, 3  ;;  %s1737_s27 = smov 3   ;;  %s1738_s28 = smov 4  }
  0x12   :  { %177 = vrot.lane.b32.xlu1 %v92_v9, %s1735_s1  ;;  %147 = vrot.lane.b32.xlu0 %v68_v10, %s1736_s22  ;;  %v94_v13 = vsel %vm89_vm0, %v91_v4, %v93_v7  ;;  %v70_v14 = vsel %vm65_vm1, %v67_v6, %v69_v8  ;;  %v71_v18 = vrot.slane %v1804_v17, 1  ;;  %v137_v21 = vrot.slane %v1774_v0, 4  ;;  %v1818_v23 = vld [vmem:[%s2229_s0 + $0x20] sm:$0xff]  ;;  %v31_v32 = vld [vmem:[%s2229_s0 + $0x28] sm:$0xff]  ;;  %s1741_s13 = smov 12   ;;  %s1742_s14 = smov 24  }
  0x13   :  { %1487 = vmatprep.subr.msk.mxu1 %vm113_vm2, %v311_v12  ;;  %v118_v19 = vsel %vm113_vm2, %v115_v11, %v117_v15  ;;  %v116_v20 = vsel %vm113_vm2, %v114_v16, %v115_v11  ;;  %v138_v22 = vrot.slane %v1779_v1, 4  ;;  %vm43_vm3 = vcmask 1043456   ;;  %v1838_v33 = vld [vmem:[%s2229_s0 + $0x30] sm:$0xff]  ;;  %v33_v50 = vld [vmem:[%s2229_s0 + $0x38] sm:$0xff]  ;;  %v1875_v58 = vld [vmem:[%s2229_s0 + $0x40] sm:$0xff]  ;;  %s1743_s15 = smov 18  }
  0x14   :  { %1488 = vmatpush3.msk.msra.mxu1 %vm113_vm2, %v311_v12  ;;  %v72_v24 = vsel %vm65_vm1, %v69_v8, %v71_v18  ;;  %v73_v26 = vrot.slane %v1818_v23, 1  ;;  %v140_v27 = vrot.slane %v1784_v2, 4  ;;  %v95_v30 = vrot.slane %v1804_v17, 2  ;;  %v35_v11 = vld [vmem:[%s2229_s0 + $0x48] sm:$0xff]  ;;  %s1744_s16 = smov 32   ;;  %s1745_s17 = smov 16  }
  0x15   :  { %v139_v25 = vsel %vm43_vm3, %v137_v21, %v138_v22  ;;  %v97_v31 = vrot.slane %v1818_v23, 2  ;;  %v44_v34 = vrot.slane %v31_v32, 4  ;;  %v45_v35 = vrot.slane %v1838_v33, 4  ;;  %s1747_s18 = smov 64   ;;  %s1748_s19 = smov 48  }
  0x16   :  { %179 = vrot.lane.b32.xlu1 %v94_v13, %s1735_s1  ;;  %149 = vrot.lane.b32.xlu0 %v70_v14, %s1736_s22  ;;  %v74_v28 = vsel %vm65_vm1, %v71_v18, %v73_v26  ;;  %v141_v29 = vsel %vm43_vm3, %v138_v22, %v140_v27  ;;  %v96_v37 = vsel %vm89_vm0, %v93_v7, %v95_v30  ;;  %v119_v38 = vrot.slane %v1804_v17, 3  ;;  %v36_v18 = vld [vmem:[%s2229_s0 + $0x50] sm:$0xff]  ;;  %s1740_s0 = smov 6   ;;  %s1749_s20 = smov 96  }
  0x17   :  { %v98_v36 = vsel %vm89_vm0, %v95_v30, %v97_v31  ;;  %v121_v39 = vrot.slane %v1818_v23, 3  ;;  %v1848_v40 = vsel %vm43_vm3, %v44_v34, %v45_v35  ;;  %v75_v41 = vrot.slane %v31_v32, 1  ;;  %s1750_s21 = smov 80  }
  0x18   :  { %v120_v43 = vsel %vm113_vm2, %v117_v15, %v119_v38  ;;  %v142_v44 = vrot.slane %v1804_v17, 4  ;;  %v78_v47 = vrot.slane %v31_v32, 5  ;;  %v79_v48 = vrot.slane %v1838_v33, 5 }
  0x19   :  { %v122_v42 = vsel %vm113_vm2, %v119_v38, %v121_v39  ;;  %v76_v45 = vsel %vm65_vm1, %v73_v26, %v75_v41  ;;  %v144_v49 = vrot.slane %v1818_v23, 4  ;;  %vm77_vm4 = vcmask 1042432  }
  0x1a   :  { %209 = vrot.lane.b32.xlu1 %v118_v19, %s1737_s27  ;;  %207 = vrot.lane.b32.xlu0 %v116_v20, %s1737_s27  ;;  %v143_v46 = vsel %vm43_vm3, %v140_v27, %v142_v44  ;;  %v47_v51 = vrot.slane %v33_v50, 4  ;;  %v102_v52 = vrot.slane %v31_v32, 6  ;;  %v103_v53 = vrot.slane %v1838_v33, 6 }
  0x1b   :  { %v80_v54 = vsel %vm77_vm4, %v78_v47, %v79_v48  ;;  %v145_v55 = vsel %vm43_vm3, %v142_v44, %v144_v49  ;;  %v99_v56 = vrot.slane %v31_v32, 2  ;;  %vm101_vm5 = vcmask 1041408  }
  0x1c   :  { %v1870_v57 = vsel %vm43_vm3, %v45_v35, %v47_v51  ;;  %v126_v59 = vrot.slane %v31_v32, 7  ;;  %v49_v60 = vrot.slane %v1875_v58, 4  ;;  %v104_v61 = vsel %vm101_vm5, %v102_v52, %v103_v53 }
  0x1d   :  { %v100_v62 = vsel %vm89_vm0, %v97_v31, %v99_v56  ;;  %v127_v63 = vrot.slane %v1838_v33, 7  ;;  %v123_v3 = vrot.slane %v31_v32, 3  ;;  %vm125_vm6 = vcmask 1040384  }
  0x1e   :  { %151 = vrot.lane.b32.xlu1 %v72_v24, %s1736_s22  ;;  %237 = vrot.lane.b32.xlu0 %v139_v25, %s1738_s28  ;;  %v1884_v4 = vsel %vm43_vm3, %v47_v51, %v49_v60  ;;  %v81_v7 = vrot.slane %v33_v50, 5  ;;  %v146_v9 = vsel %vm43_vm3, %v144_v49, %v44_v34  ;;  %v83_v10 = vrot.slane %v1875_v58, 5 }
  0x1f   :  { %v128_v5 = vsel %vm125_vm6, %v126_v59, %v127_v63  ;;  %v124_v6 = vsel %vm113_vm2, %v121_v39, %v123_v3  ;;  %v51_v12 = vrot.slane %v35_v11, 4  ;;  %v105_v14 = vrot.slane %v33_v50, 6 }
  0x20   :  { %v82_v8 = vsel %vm77_vm4, %v79_v48, %v81_v7  ;;  %v84_v13 = vsel %vm77_vm4, %v81_v7, %v83_v10  ;;  %v107_v15 = vrot.slane %v1875_v58, 6  ;;  %v53_v19 = vrot.slane %v36_v18, 4 }
  0x21   :  { %v1903_v16 = vsel %vm43_vm3, %v49_v60, %v51_v12  ;;  %v106_v21 = vsel %vm101_vm5, %v103_v53, %v105_v14  ;;  %v129_v22 = vrot.slane %v33_v50, 7  ;;  %v131_v24 = vrot.slane %v1875_v58, 7 }
  0x22   :  { %153 = vrot.lane.b32.xlu1 %v74_v28, %s1736_s22  ;;  %239 = vrot.lane.b32.xlu0 %v141_v29, %s1738_s28  ;;  %v108_v20 = vsel %vm101_vm5, %v105_v14, %v107_v15  ;;  %v1915_v25 = vsel %vm43_vm3, %v51_v12, %v53_v19  ;;  %v85_v28 = vrot.slane %v35_v11, 5  ;;  %v87_v30 = vrot.slane %v36_v18, 5 }
  0x23   :  { %v132_v26 = vsel %vm125_vm6, %v129_v22, %v131_v24  ;;  %v130_v27 = vsel %vm125_vm6, %v127_v63, %v129_v22  ;;  %v109_v32 = vrot.slane %v35_v11, 6  ;;  %vm267_vm7 = vcmask 7168  }
  0x24   :  { %v86_v29 = vsel %vm77_vm4, %v83_v10, %v85_v28  ;;  %v88_v31 = vsel %vm77_vm4, %v85_v28, %v87_v30  ;;  %vm278_vm8 = vcmask 15360   ;;  %vm289_vm9 = vcmask 23552  }
  0x25   :  { %v110_v35 = vsel %vm101_vm5, %v107_v15, %v109_v32  ;;  %vm300_vm10 = vcmask 31744   ;;  %vm317_vm11 = vcmask 39936   ;;  %vm557_vm13 = vcmask 654336  }
  0x26   :  { %183 = vrot.lane.b32.xlu1 %v98_v36, %s1735_s1  ;;  %181 = vrot.lane.b32.xlu0 %v96_v37, %s1735_s1  ;;  %v133_v36 = vrot.slane %v35_v11, 7  ;;  %v135_v37 = vrot.slane %v36_v18, 7 }
  0x28   :  { %v136_v38 = vsel %vm125_vm6, %v133_v36, %v135_v37  ;;  %v134_v39 = vsel %vm125_vm6, %v131_v24, %v133_v36 }
  0x2a   :  { %213 = vrot.lane.b32.xlu1 %v122_v42, %s1737_s27  ;;  %211 = vrot.lane.b32.xlu0 %v120_v43, %s1737_s27 }
  0x2e   :  { %155 = vrot.lane.b32.xlu1 %v76_v45, %s1736_s22  ;;  %241 = vrot.lane.b32.xlu0 %v143_v46, %s1738_s28 }
  0x32   :  { %157 = vrot.lane.b32.xlu1 %v80_v54, %s1736_s22  ;;  %243 = vrot.lane.b32.xlu0 %v145_v55, %s1738_s28 }
  0x36   :  { %187 = vrot.lane.b32.xlu1 %v104_v61, %s1735_s1  ;;  %185 = vrot.lane.b32.xlu0 %v100_v62, %s1735_s1 }
  0x3a   :  { %217 = vrot.lane.b32.xlu1 %v128_v5, %s1737_s27  ;;  %215 = vrot.lane.b32.xlu0 %v124_v6, %s1737_s27 }
  0x3e   :  { %159 = vrot.lane.b32.xlu1 %v82_v8, %s1736_s22  ;;  %245 = vrot.lane.b32.xlu0 %v146_v9, %s1738_s28 }
  0x42   :  { %161 = vrot.lane.b32.xlu1 %v84_v13, %s1736_s22  ;;  %247 = vrot.lane.b32.xlu0 %v1838_v33, %s1738_s28  ;;  %v111_v33 = vrot.slane %v36_v18, 6 }
  0x44   :  { %v112_v34 = vsel %vm101_vm5, %v109_v32, %v111_v33 }
  0x46   :  { %191 = vrot.lane.b32.xlu1 %v108_v20, %s1735_s1  ;;  %189 = vrot.lane.b32.xlu0 %v106_v21, %s1735_s1 }
  0x4a   :  { %221 = vrot.lane.b32.xlu1 %v132_v26, %s1737_s27  ;;  %219 = vrot.lane.b32.xlu0 %v130_v27, %s1737_s27 }
  0x4e   :  { %163 = vrot.lane.b32.xlu1 %v86_v29, %s1736_s22  ;;  %249 = vrot.lane.b32.xlu0 %v33_v50, %s1738_s28 }
  0x52   :  { %165 = vrot.lane.b32.xlu1 %v88_v31, %s1736_s22  ;;  %251 = vrot.lane.b32.xlu0 %v1875_v58, %s1738_s28  ;;  %s1752_s22 = smov [#allocation5]  }
  0x53   :  { %s1351_s23 = sshll.u32 %s1752_s22, 4  ;;  %s1352_s23 = int_to_ptr.vmem [resolvable:$true] %s1351_s23 }
  0x54   :  { %s1708_s24 = scalar_lea.vmem %s1352_s23, 32  ;;  %p1713_p6 = scmp.lt.s32.totalorder %s1352_s23, %s1352_s23 }
  0x55   :  { %p1709_p5 = scmp.ne.s32.totalorder %s1352_s23, %s1708_s24  ;;  %p1714_p7 = scmp.lt.s32.totalorder %s1708_s24, %s1708_s24 }
  0x56   :  { %195 = vrot.lane.b32.xlu1 %v112_v34, %s1735_s1  ;;  %193 = vrot.lane.b32.xlu0 %v110_v35, %s1735_s1  ;;  %s1751_s1 = smov 112  }
  0x57   :  { %p1715_p8 = por %p1714_p7, %p1713_p6 }
  0x59   :  { %p1716_p9 = pnand %p1715_p8, %p1709_p5 }
  0x5a   :  { %225 = vrot.lane.b32.xlu1 %v136_v38, %s1737_s27  ;;  %223 = vrot.lane.b32.xlu0 %v134_v39, %s1737_s27 }
  0x5e   :  { %255 = vrot.lane.b32.xlu1 %v36_v18, %s1738_s28  ;;  %253 = vrot.lane.b32.xlu0 %v35_v11, %s1738_s28 }
  0x84   :  { %v178_v41 = vpop.permute.xlu1 %177  ;;  %v148_v42 = vpop.permute.xlu0 %147 }
  0x85   :  { %v268_v45 = vsel %vm267_vm7, %v1774_v0, %v148_v42 }
  0x86   :  { %v279_v48 = vsel %vm278_vm8, %v268_v45, %v178_v41 }
  0x88   :  { %v180_v43 = vpop.permute.xlu1 %179  ;;  %v150_v44 = vpop.permute.xlu0 %149 }
  0x89   :  { %v269_v49 = vsel %vm267_vm7, %v1779_v1, %v150_v44 }
  0x8a   :  { %v280_v0 = vsel %vm278_vm8, %v269_v49, %v180_v43 }
  0x8c   :  { %v210_v46 = vpop.permute.xlu1 %209  ;;  %v208_v47 = vpop.permute.xlu0 %207 }
  0x8d   :  { %v290_v50 = vsel %vm289_vm9, %v279_v48, %v208_v47  ;;  %v291_v54 = vsel %vm289_vm9, %v280_v0, %v210_v46 }
  0x90   :  { %v152_v51 = vpop.permute.xlu1 %151  ;;  %v238_v52 = vpop.permute.xlu0 %237 }
  0x91   :  { %v301_v53 = vsel %vm300_vm10, %v290_v50, %v238_v52  ;;  %v270_v62 = vsel %vm267_vm7, %v1784_v2, %v152_v51 }
  0x92   :  { %1489 = vmatprep.mubr.msk.f32.mxu1 %vm317_vm11, %v301_v53 }
  0x94   :  { %v154_v55 = vpop.permute.xlu1 %153  ;;  %v240_v56 = vpop.permute.xlu0 %239 }
  0x95   :  { %v302_v58 = vsel %vm300_vm10, %v291_v54, %v240_v56  ;;  %v271_v8 = vsel %vm267_vm7, %v1804_v17, %v154_v55  ;;  %v466_v56 = vlaneseq }
  0x96   :  { %1490 = vmatmul.mubr.msk.f32.vlgmr.msra.gmra.mxu1 %vm317_vm11, %v302_v58 }
  0x97   :  { %v2000_v58 = vshrl.u32 %v466_v56, 7 }
  0x98   :  { %v184_v59 = vpop.permute.xlu1 %183  ;;  %v182_v1 = vpop.permute.xlu0 %181 }
  0x99   :  { %v281_v63 = vsel %vm278_vm8, %v270_v62, %v182_v1  ;;  %v282_v9 = vsel %vm278_vm8, %v271_v8, %v184_v59  ;;  %v2002_v59 = vand.u32 127, %v466_v56  ;;  %v489_v1 = vmul.u32 2, %v2000_v58 }
  0x9b   :  { %vm537_vm12 = vcmp.eq.s32.totalorder %v2002_v59, %v489_v1 }
  0x9c   :  { %v214_v60 = vpop.permute.xlu1 %213  ;;  %v212_v61 = vpop.permute.xlu0 %211 }
  0x9d   :  { %v292_v3 = vsel %vm289_vm9, %v281_v63, %v212_v61  ;;  %v293_v10 = vsel %vm289_vm9, %v282_v9, %v214_v60  ;;  %v1739_v60 = vmov 0.0  }
  0x9e   :  { %v2009_v61 = vsel %vm537_vm12, 1.0, %v1739_v60  ;;  %vm766_vm12 = vcmask 146432  }
  0xa0   :  { %v156_v5 = vpop.permute.xlu1 %155  ;;  %v242_v6 = vpop.permute.xlu0 %241 }
  0xa1   :  { %v303_v7 = vsel %vm300_vm10, %v292_v3, %v242_v6  ;;  %v272_v19 = vsel %vm267_vm7, %v1818_v23, %v156_v5 }
  0xa2   :  { %1492 = vmatprep.mubr.msk.f32.mxu1 %vm317_vm11, %v303_v7 }
  0xa4   :  { %v158_v11 = vpop.permute.xlu1 %157  ;;  %v244_v12 = vpop.permute.xlu0 %243 }
  0xa5   :  { %v304_v2 = vsel %vm300_vm10, %v293_v10, %v244_v12  ;;  %v273_v26 = vsel %vm267_vm7, %v1848_v40, %v158_v11  ;;  %v1360_v10 = vld [vmem:[#allocation2 + $0x8] ss:$0 sm:$0xff] }
  0xa6   :  { %1493 = vmatmul.mubr.msk.f32.gmra.mxu1 %vm317_vm11, %v304_v2 }
  0xa8   :  { %v188_v13 = vpop.permute.xlu1 %187  ;;  %v186_v14 = vpop.permute.xlu0 %185 }
  0xa9   :  { %v283_v17 = vsel %vm278_vm8, %v272_v19, %v186_v14  ;;  %v284_v27 = vsel %vm278_vm8, %v273_v26, %v188_v13 }
  0xac   :  { %v218_v15 = vpop.permute.xlu1 %217  ;;  %v216_v18 = vpop.permute.xlu0 %215 }
  0xad   :  { %v294_v20 = vsel %vm289_vm9, %v283_v17, %v216_v18  ;;  %v295_v28 = vsel %vm289_vm9, %v284_v27, %v218_v15  ;;  %v468_v18 = vadd.s32 8, %v2000_v58  ;;  %v469_v17 = vadd.s32 16, %v2000_v58 }
  0xaf   :  { %v491_v27 = vmul.u32 2, %v469_v17  ;;  %v845_v17 = vld [vmem:[#allocation2 + $0x10] sm:$0xff] }
  0xb0   :  { %v160_v21 = vpop.permute.xlu1 %159  ;;  %v246_v22 = vpop.permute.xlu0 %245 }
  0xb1   :  { %v305_v24 = vsel %vm300_vm10, %v294_v20, %v246_v22  ;;  %v274_v35 = vsel %vm267_vm7, %v1870_v57, %v160_v21  ;;  %v473_v20 = vadd.s32 48, %v2000_v58  ;;  %v490_v22 = vmul.u32 2, %v468_v18 }
  0xb2   :  { %1495 = vmatprep.mubr.msk.f32.mxu1 %vm317_vm11, %v305_v24  ;;  %v2017_v24 = vadd.s32 24, %v2000_v58  ;;  %vm539_vm15 = vcmp.eq.s32.totalorder %v2002_v59, %v491_v27 }
  0xb3   :  { %vm538_vm14 = vcmp.eq.s32.totalorder %v2002_v59, %v490_v22 }
  0xb4   :  { %v162_v29 = vpop.permute.xlu1 %161  ;;  %v248_v30 = vpop.permute.xlu0 %247 }
  0xb5   :  { %v306_v23 = vsel %vm300_vm10, %v295_v28, %v248_v30  ;;  %v275_v42 = vsel %vm267_vm7, %v1884_v4, %v162_v29  ;;  %v474_v28 = vadd.s32 56, %v2000_v58  ;;  %v471_v29 = vadd.s32 32, %v2000_v58 }
  0xb6   :  { %1496 = vmatmul.mubr.msk.f32.gmra.mxu1 %vm317_vm11, %v306_v23  ;;  %v1377_v30 = vadd.s32 4294967256, %v473_v20  ;;  %v475_v23 = vadd.s32 64, %v2000_v58 }
  0xb8   :  { %v192_v31 = vpop.permute.xlu1 %191  ;;  %v190_v32 = vpop.permute.xlu0 %189 }
  0xb9   :  { %v285_v40 = vsel %vm278_vm8, %v274_v35, %v190_v32  ;;  %v286_v43 = vsel %vm278_vm8, %v275_v42, %v192_v31  ;;  %v492_v32 = vmul.u32 2, %v2017_v24  ;;  %v476_v35 = vadd.s32 72, %v2000_v58 }
  0xba   :  { %v522_v42 = vadd.s32 1, %v489_v1 }
  0xbb   :  { %vm540_vm4 = vcmp.eq.s32.totalorder %v2002_v59, %v492_v32 }
  0xbc   :  { %v222_v33 = vpop.permute.xlu1 %221  ;;  %v220_v34 = vpop.permute.xlu0 %219 }
  0xbd   :  { %v296_v36 = vsel %vm289_vm9, %v285_v40, %v220_v34  ;;  %v297_v57 = vsel %vm289_vm9, %v286_v43, %v222_v33  ;;  %v1378_v34 = vadd.s32 4294967256, %v474_v28  ;;  %v493_v40 = vmul.u32 2, %v471_v29 }
  0xbf   :  { %v514_v43 = vmul.u32 2, %v1378_v34  ;;  %vm541_vm5 = vcmp.eq.s32.totalorder %v2002_v59, %v493_v40 }
  0xc0   :  { %v164_v37 = vpop.permute.xlu1 %163  ;;  %v250_v38 = vpop.permute.xlu0 %249 }
  0xc1   :  { %v276_v39 = vsel %vm267_vm7, %v1903_v16, %v164_v37  ;;  %v307_v41 = vsel %vm300_vm10, %v296_v36, %v250_v38  ;;  %v513_v36 = vmul.u32 2, %v1377_v30  ;;  %v1379_v37 = vadd.s32 4294967256, %v475_v23 }
  0xc2   :  { %1498 = vmatprep.mubr.msk.f32.mxu1 %vm317_vm11, %v307_v41  ;;  %v549_v41 = vsel %vm539_vm15, 1.0, %v1739_v60  ;;  %vm978_vm15 = vcmask 261120  }
  0xc4   :  { %v166_v44 = vpop.permute.xlu1 %165  ;;  %v252_v45 = vpop.permute.xlu0 %251 }
  0xc5   :  { %v277_v46 = vsel %vm267_vm7, %v1915_v25, %v166_v44  ;;  %v308_v47 = vsel %vm300_vm10, %v297_v57, %v252_v45  ;;  %v1380_v57 = vadd.s32 4294967256, %v476_v35  ;;  %v523_v44 = vadd.s32 1, %v513_v36 }
  0xc6   :  { %1499 = vmatmul.mubr.msk.f32.gmra.mxu1 %vm317_vm11, %v308_v47  ;;  %v515_v45 = vmul.u32 2, %v1379_v37  ;;  %v551_v47 = vsel %vm541_vm5, 1.0, %v1739_v60  ;;  %vm542_vm7 = vcmp.eq.s32.totalorder %v2002_v59, %v522_v42  ;;  %vm1109_vm5 = vcmask 130048  }
  0xc8   :  { %v196_v16 = vpop.permute.xlu1 %195  ;;  %v194_v48 = vpop.permute.xlu0 %193 }
  0xc9   :  { %v288_v49 = vsel %vm278_vm8, %v277_v46, %v196_v16  ;;  %v287_v4 = vsel %vm278_vm8, %v276_v39, %v194_v48  ;;  %v2027_v39 = vsel %vm538_vm14, 1.0, %v1739_v60  ;;  %v550_v46 = vsel %vm540_vm4, 1.0, %v1739_v60 }
  0xca   :  { %v524_v16 = vadd.s32 1, %v514_v43  ;;  %v516_v48 = vmul.u32 2, %v1380_v57  ;;  %vm543_vm8 = vcmp.eq.s32.totalorder %v2002_v59, %v523_v44  ;;  %vm854_vm14 = vcmask 244736  }
  0xcb   :  { %vm1746_vm4 = vmmov 0  }
  0xcc   :  { %v226_v50 = vpop.permute.xlu1 %225  ;;  %v224_v51 = vpop.permute.xlu0 %223 }
  0xcd   :  { %v299_v52 = vsel %vm289_vm9, %v288_v49, %v226_v50  ;;  %v298_v53 = vsel %vm289_vm9, %v287_v4, %v224_v51  ;;  %v525_v49 = vadd.s32 1, %v515_v45  ;;  %v2045_v4 = vsel %vm542_vm7, 1.0, %v1739_v60 }
  0xce   :  { %v553_v50 = vsel %vm543_vm8, 1.0, %v1739_v60  ;;  %vm544_vm9 = vcmp.eq.s32.totalorder %v2002_v59, %v524_v16  ;;  %v526_v51 = vadd.s32 1, %v516_v48  ;;  %vm1112_vm7 = vcmask 392192  }
  0xcf   :  { %vm1114_vm8 = vcmask 523264  }
  0xd0   :  { %v256_v0 = vpop.permute.xlu1 %255  ;;  %v254_v54 = vpop.permute.xlu0 %253 }
  0xd1   :  { %v310_v25 = vsel %vm300_vm10, %v299_v52, %v256_v0  ;;  %v309_v55 = vsel %vm300_vm10, %v298_v53, %v254_v54  ;;  %vm545_vm10 = vcmp.eq.s32.totalorder %v2002_v59, %v525_v49  ;;  %v554_v52 = vsel %vm544_vm9, 1.0, %v1739_v60 }
  0xd2   :  { %1501 = vmatprep.mubr.msk.f32.mxu1 %vm317_vm11, %v309_v55  ;;  %v555_v53 = vsel %vm545_vm10, 1.0, %v1739_v60  ;;  %vm1117_vm9 = vcmask 785408   ;;  %vm1119_vm10 = vcmask 916480  }
  0xd3   :  { %1502 = vmatmul.mubr.msk.f32.gmra.mxu1 %vm317_vm11, %v310_v25  ;;  %vm546_vm11 = vcmp.eq.s32.totalorder %v2002_v59, %v526_v51 }
  0xd4   :  { %1524 = vmatprep.mubr.msk.f32.mxu1 %vm557_vm13, %v2009_v61  ;;  %v556_v0 = vsel %vm546_vm11, 1.0, %v1739_v60 }
 0x156   :  { %v1491_v62 = vpop.f32.mrf.mxu1 }
 0x157   :  { %v423_v33 = vadd.f32 %v1491_v62, %v1360_v10 }
 0x158   :  { %v417_v63 = vpop.f32.mrf.mxu1 }
 0x159   :  { %v418_v38 = vadd.f32 %v1360_v10, %v417_v63 }
 0x166   :  { %v1494_v3 = vpop.f32.mrf.mxu1 }
 0x167   :  { %v433_v26 = vadd.f32 %v1494_v3, %v1360_v10 }
 0x168   :  { %v427_v5 = vpop.f32.mrf.mxu1 }
 0x169   :  { %v428_v31 = vadd.f32 %v1360_v10, %v427_v5  ;;  %v848_v5 = vld [vmem:[#allocation2 + $0x28] sm:$0x3f] }
 0x16a   :  { %1539 = vmatprep.subr.msk.mxu0 %vm89_vm0, %v848_v5 }
 0x16b   :  { %1540 = vmatpush3.msk.msra.mxu0 %vm89_vm0, %v848_v5 }
 0x176   :  { %v1497_v6 = vpop.f32.mrf.mxu1 }
 0x177   :  { %v443_v19 = vadd.f32 %v1497_v6, %v1360_v10 }
 0x178   :  { %v437_v7 = vpop.f32.mrf.mxu1 }
 0x179   :  { %v438_v21 = vadd.f32 %v1360_v10, %v437_v7 }
 0x186   :  { %v1500_v8 = vpop.f32.mrf.mxu1 }
 0x187   :  { %v453_v14 = vadd.f32 %v1500_v8, %v1360_v10 }
 0x188   :  { %v447_v9 = vpop.f32.mrf.mxu1 }
 0x189   :  { %v448_v15 = vadd.f32 %v1360_v10, %v447_v9 }
 0x193   :  { %v1503_v11 = vpop.f32.mrf.mxu1 }
 0x194   :  { %v463_v12 = vadd.f32 %v1503_v11, %v1360_v10  ;;  %v847_v11 = vld [vmem:[#allocation2 + $0x20] sm:$0xff] }
 0x195   :  { %v457_v2 = vpop.f32.mrf.mxu1  ;;  %1541 = vmatprep.subr.mxu0 %v847_v11 }
 0x196   :  { %v458_v13 = vadd.f32 %v1360_v10, %v457_v2  ;;  %1504 = vmatprep.subr.mxu1 %v463_v12  ;;  %1542 = vmatpush3.msra.mxu0 %v847_v11 }
 0x197   :  { %1505 = vmatpush3.msra.mxu1 %v463_v12  ;;  %v846_v12 = vld [vmem:[#allocation2 + $0x18] sm:$0xff] }
 0x198   :  { %1506 = vmatprep.subr.mxu1 %v458_v13  ;;  %1543 = vmatprep.subr.mxu0 %v846_v12 }
 0x199   :  { %1507 = vmatpush3.msra.mxu1 %v458_v13  ;;  %1544 = vmatpush3.msra.mxu0 %v846_v12 }
 0x19a   :  { %1508 = vmatprep.subr.mxu1 %v453_v14  ;;  %1545 = vmatprep.subr.mxu0 %v845_v17 }
 0x19b   :  { %1509 = vmatpush3.msra.mxu1 %v453_v14  ;;  %1546 = vmatpush3.msra.mxu0 %v845_v17 }
 0x19c   :  { %1510 = vmatprep.subr.mxu1 %v448_v15 }
 0x19d   :  { %1511 = vmatpush3.msra.mxu1 %v448_v15 }
 0x19e   :  { %1512 = vmatprep.subr.mxu1 %v443_v19 }
 0x19f   :  { %1513 = vmatpush3.msra.mxu1 %v443_v19 }
 0x1a0   :  { %1514 = vmatprep.subr.mxu1 %v438_v21 }
 0x1a1   :  { %1515 = vmatpush3.msra.mxu1 %v438_v21 }
 0x1a2   :  { %1516 = vmatprep.subr.mxu1 %v433_v26 }
 0x1a3   :  { %1517 = vmatpush3.msra.mxu1 %v433_v26 }
 0x1a4   :  { %1518 = vmatprep.subr.mxu1 %v428_v31 }
 0x1a5   :  { %1519 = vmatpush3.msra.mxu1 %v428_v31 }
 0x1a6   :  { %1520 = vmatprep.subr.mxu1 %v423_v33 }
 0x1a7   :  { %1521 = vmatpush3.msra.mxu1 %v423_v33 }
 0x1a8   :  { %1522 = vmatprep.subr.mxu1 %v418_v38 }
 0x1a9   :  { %1523 = vmatpush3.msra.mxu1 %v418_v38 }
 0x1aa   :  { %1525 = vmatmul.mubr.msk.f32.vlgmr.msra.gmra.mxu1 %vm557_vm13, %v2027_v39  ;;  %1567 = vmatprep.subr.mxu1 %v1739_v60 }
 0x1ab   :  { %1527 = vmatprep.mubr.msk.f32.mxu1 %vm557_vm13, %v549_v41 }
 0x1ae   :  { %1528 = vmatmul.mubr.msk.f32.gmra.mxu1 %vm557_vm13, %v550_v46 }
 0x1af   :  { %1530 = vmatprep.mubr.msk.f32.mxu1 %vm557_vm13, %v551_v47 }
 0x1b2   :  { %1531 = vmatmul.mubr.msk.f32.gmra.mxu1 %vm557_vm13, %v2045_v4 }
 0x1b3   :  { %1533 = vmatprep.mubr.msk.f32.mxu1 %vm557_vm13, %v553_v50 }
 0x1b6   :  { %1534 = vmatmul.mubr.msk.f32.gmra.mxu1 %vm557_vm13, %v554_v52 }
 0x1b7   :  { %1536 = vmatprep.mubr.msk.f32.mxu1 %vm557_vm13, %v555_v53 }
 0x1ba   :  { %1537 = vmatmul.mubr.msk.f32.gmra.mxu1 %vm557_vm13, %v556_v0 }
 0x1bb   :  { %1599 = vmatprep.mubr.msk.f32.mxu1 %vm1746_vm4, %v1739_v60 }
 0x26a   :  { %v1526_v54 = vpop.f32.mrf.mxu1 }
 0x26c   :  { %v654_v25 = vpop.f32.mrf.mxu1 }
 0x26e   :  { %v1529_v55 = vpop.f32.mrf.mxu1 }
 0x270   :  { %v664_v56 = vpop.f32.mrf.mxu1 }
 0x272   :  { %v1532_v58 = vpop.f32.mrf.mxu1 }
 0x273   :  { %v703_v62 = vmax.f32 %v654_v25, %v1532_v58 }
 0x274   :  { %v674_v1 = vpop.f32.mrf.mxu1 }
 0x275   :  { %v2061_v7 = vmax.f32 %v703_v62, 0.0 }
 0x276   :  { %v1535_v63 = vpop.f32.mrf.mxu1 }
 0x277   :  { %v705_v3 = vmax.f32 %v664_v56, %v1535_v63  ;;  %v716_v14 = vrot.slane %v2061_v7, 1  ;;  %v727_v21 = vrot.slane %v2061_v7, 2  ;;  %v749_v30 = vrot.slane %v2061_v7, 4 }
 0x278   :  { %v684_v6 = vpop.f32.mrf.mxu1  ;;  %v738_v23 = vrot.slane %v2061_v7, 3 }
 0x279   :  { %v2063_v8 = vmax.f32 %v705_v3, 0.0  ;;  %v704_v9 = vmax.f32 %v1526_v54, %v684_v6 }
 0x27a   :  { %v1538_v22 = vpop.f32.mrf.mxu1 }
 0x27b   :  { %v2066_v10 = vmax.f32 %v704_v9, 0.0  ;;  %v719_v13 = vrot.slane %v2063_v8, 1  ;;  %v730_v20 = vrot.slane %v2063_v8, 2  ;;  %v707_v31 = vmax.f32 %v674_v1, %v1538_v22 }
 0x27c   :  { %v694_v32 = vpop.f32.mrf.mxu1  ;;  %v752_v35 = vrot.slane %v2063_v8, 4  ;;  %v741_v40 = vrot.slane %v2063_v8, 3 }
 0x27d   :  { %v717_v2 = vrot.slane %v2066_v10, 1  ;;  %v728_v19 = vrot.slane %v2066_v10, 2  ;;  %v750_v28 = vrot.slane %v2066_v10, 4  ;;  %v739_v29 = vrot.slane %v2066_v10, 3 }
 0x27e   :  { %v2092_v36 = vmax.f32 %v707_v31, 0.0  ;;  %v706_v37 = vmax.f32 %v1529_v55, %v694_v32 }
 0x27f   :  { %v720_v15 = vsel %vm65_vm1, %v717_v2, %v719_v13  ;;  %v718_v18 = vsel %vm65_vm1, %v716_v14, %v717_v2  ;;  %v731_v26 = vsel %vm89_vm0, %v728_v19, %v730_v20  ;;  %v729_v27 = vsel %vm89_vm0, %v727_v21, %v728_v19 }
 0x280   :  { %723 = vrot.lane.b32.xlu1 %v720_v15, %s1740_s0  ;;  %721 = vrot.lane.b32.xlu0 %v718_v18, %s1740_s0  ;;  %v751_v33 = vsel %vm43_vm3, %v749_v30, %v750_v28  ;;  %v740_v34 = vsel %vm113_vm2, %v738_v23, %v739_v29  ;;  %v753_v38 = vsel %vm43_vm3, %v750_v28, %v752_v35  ;;  %v2098_v42 = vmax.f32 %v706_v37, 0.0 }
 0x281   :  { %v742_v41 = vsel %vm113_vm2, %v739_v29, %v741_v40  ;;  %v789_v43 = vrot.slane %v2092_v36, 2  ;;  %v776_v57 = vrot.slane %v2092_v36, 1  ;;  %v802_v44 = vrot.slane %v2092_v36, 3 }
 0x282   :  { %v813_v45 = vrot.slane %v2098_v42, 4  ;;  %v774_v46 = vrot.slane %v2098_v42, 1  ;;  %v787_v48 = vrot.slane %v2098_v42, 2  ;;  %v800_v51 = vrot.slane %v2098_v42, 3 }
 0x283   :  { %v814_v0 = vrot.slane %v2092_v36, 4 }
 0x284   :  { %734 = vrot.lane.b32.xlu1 %v731_v26, %s1741_s13  ;;  %732 = vrot.lane.b32.xlu0 %v729_v27, %s1741_s13  ;;  %v777_v47 = vsel %vm65_vm1, %v774_v46, %v776_v57  ;;  %v775_v16 = vsel %vm65_vm1, %v719_v13, %v774_v46  ;;  %v788_v49 = vsel %vm89_vm0, %v730_v20, %v787_v48  ;;  %vm763_vm1 = vcmask 97280  }
 0x285   :  { %v790_v50 = vsel %vm89_vm0, %v787_v48, %v789_v43  ;;  %v803_v52 = vsel %vm113_vm2, %v800_v51, %v802_v44  ;;  %v801_v53 = vsel %vm113_vm2, %v741_v40, %v800_v51  ;;  %v815_v54 = vsel %vm43_vm3, %v813_v45, %v814_v0 }
 0x286   :  { %vm760_vm0 = vcmask 48128   ;;  %vm769_vm2 = vcmask 195584  }
 0x288   :  { %754 = vrot.lane.b32.xlu1 %v751_v33, %s1742_s14  ;;  %743 = vrot.lane.b32.xlu0 %v740_v34, %s1743_s15 }
 0x28c   :  { %756 = vrot.lane.b32.xlu1 %v753_v38, %s1742_s14  ;;  %745 = vrot.lane.b32.xlu0 %v742_v41, %s1743_s15 }
 0x290   :  { %795 = vrot.lane.b32.xlu0 %v789_v43, %s1741_s13  ;;  %782 = vrot.lane.b32.xlu1 %v776_v57, %s1740_s0 }
 0x294   :  { %808 = vrot.lane.b32.xlu0 %v802_v44, %s1743_s15  ;;  %816 = vrot.lane.b32.xlu1 %v813_v45, %s1742_s14  ;;  %v1399_v45 = vadd.s32 4294967280, %v2017_v24  ;;  %v1176_v24 = vld [vmem:[#allocation2 + $0xb0] sm:$0xff] }
 0x295   :  { %1568 = vmatpush3.msra.mxu1 %v1176_v24 }
 0x296   :  { %1569 = vmatprep.subr.mxu1 %v1739_v60 }
 0x298   :  { %780 = vrot.lane.b32.xlu0 %v777_v47, %s1740_s0  ;;  %778 = vrot.lane.b32.xlu1 %v775_v16, %s1740_s0  ;;  %v1391_v47 = vld [vmem:[#allocation2 + $0x30] ss:$0 sm:$0xff] }
 0x29c   :  { %791 = vrot.lane.b32.xlu0 %v788_v49, %s1741_s13  ;;  %793 = vrot.lane.b32.xlu1 %v790_v50, %s1741_s13  ;;  %v962_v49 = vmul.u32 2, %v1399_v45  ;;  %v1261_v45 = vld [vmem:[#allocation2 + $0x100] sm:$0xff] }
 0x2a0   :  { %806 = vrot.lane.b32.xlu0 %v803_v52, %s1743_s15  ;;  %804 = vrot.lane.b32.xlu1 %v801_v53, %s1743_s15  ;;  %v965_v53 = vadd.s32 1, %v962_v49  ;;  %v1256_v49 = vld [vmem:[#allocation2 + $0xd8] sm:$0xff] }
 0x2a4   :  { %818 = vrot.lane.b32.xlu0 %v815_v54, %s1742_s14  ;;  %820 = vrot.lane.b32.xlu1 %v814_v0, %s1742_s14  ;;  %v1175_v54 = vld [vmem:[#allocation2 + $0xa8] sm:$0xff] }
 0x2a5   :  { %1570 = vmatpush3.msra.mxu1 %v1175_v54 }
 0x2a6   :  { %1571 = vmatprep.subr.mxu1 %v1739_v60 }
 0x2f2   :  { %v724_v25 = vpop.permute.xlu1 %723  ;;  %v722_v55 = vpop.permute.xlu0 %721 }
 0x2f3   :  { %v761_v1 = vsel %vm760_vm0, %v2061_v7, %v722_v55  ;;  %v762_v9 = vsel %vm760_vm0, %v2066_v10, %v724_v25  ;;  %v1174_v25 = vld [vmem:[#allocation2 + $0xa0] sm:$0xff] }
 0x2f4   :  { %1572 = vmatpush3.msra.mxu1 %v1174_v25  ;;  %v1170_v55 = vld [vmem:[#allocation2 + $0x80] sm:$0xff] }
 0x2f5   :  { %1573 = vmatprep.subr.mxu1 %v1739_v60 }
 0x2f6   :  { %v735_v56 = vpop.permute.xlu1 %734  ;;  %v733_v58 = vpop.permute.xlu0 %732 }
 0x2f7   :  { %v764_v62 = vsel %vm763_vm1, %v761_v1, %v733_v58  ;;  %v765_v11 = vsel %vm763_vm1, %v762_v9, %v735_v56  ;;  %v1169_v56 = vld [vmem:[#allocation2 + $0x78] sm:$0xff] }
 0x2fa   :  { %v755_v63 = vpop.permute.xlu1 %754  ;;  %v744_v3 = vpop.permute.xlu0 %743 }
 0x2fb   :  { %v767_v5 = vsel %vm766_vm12, %v764_v62, %v744_v3  ;;  %v1167_v3 = vld [vmem:[#allocation2 + $0x68] sm:$0xff] }
 0x2fc   :  { %v770_v6 = vsel %vm769_vm2, %v767_v5, %v755_v63  ;;  %v1168_v63 = vld [vmem:[#allocation2 + $0x70] sm:$0xff] }
 0x2fd   :  { %1547 = vmatprep.mubr.msk.f32.mxu0 %vm854_vm14, %v770_v6 }
 0x2fe   :  { %v757_v12 = vpop.permute.xlu1 %756  ;;  %v746_v2 = vpop.permute.xlu0 %745 }
 0x2ff   :  { %v768_v7 = vsel %vm766_vm12, %v765_v11, %v746_v2  ;;  %v1165_v2 = vld [vmem:[#allocation2 + $0x58] sm:$0xff] }
 0x300   :  { %v771_v13 = vsel %vm769_vm2, %v768_v7, %v757_v12  ;;  %v1166_v12 = vld [vmem:[#allocation2 + $0x60] sm:$0xff] }
 0x301   :  { %1548 = vmatmul.mubr.msk.f32.vlgmr.msra.gmra.mxu0 %vm854_vm14, %v771_v13  ;;  %v1164_v13 = vld [vmem:[#allocation2 + $0x50] sm:$0xff] }
 0x302   :  { %v796_v14 = vpop.permute.xlu0 %795  ;;  %v783_v15 = vpop.permute.xlu1 %782 }
 0x303   :  { %v827_v26 = vsel %vm760_vm0, %v2092_v36, %v783_v15 }
 0x304   :  { %v830_v31 = vsel %vm763_vm1, %v827_v26, %v796_v14 }
 0x306   :  { %v809_v18 = vpop.permute.xlu0 %808  ;;  %v817_v19 = vpop.permute.xlu1 %816 }
 0x30a   :  { %v781_v17 = vpop.permute.xlu0 %780  ;;  %v779_v20 = vpop.permute.xlu1 %778 }
 0x30b   :  { %v825_v22 = vsel %vm760_vm0, %v2063_v8, %v779_v20  ;;  %v826_v23 = vsel %vm760_vm0, %v2098_v42, %v781_v17  ;;  %v833_v8 = vsel %vm766_vm12, %v830_v31, %v809_v18 }
 0x30e   :  { %v792_v21 = vpop.permute.xlu0 %791  ;;  %v794_v10 = vpop.permute.xlu1 %793 }
 0x30f   :  { %v828_v27 = vsel %vm763_vm1, %v825_v22, %v792_v21  ;;  %v829_v32 = vsel %vm763_vm1, %v826_v23, %v794_v10  ;;  %v1163_v22 = vld [vmem:[#allocation2 + $0x48] sm:$0xff] }
 0x312   :  { %v807_v28 = vpop.permute.xlu0 %806  ;;  %v805_v29 = vpop.permute.xlu1 %804 }
 0x313   :  { %v831_v30 = vsel %vm766_vm12, %v828_v27, %v805_v29  ;;  %v832_v34 = vsel %vm766_vm12, %v829_v32, %v807_v28  ;;  %v1162_v28 = vld [vmem:[#allocation2 + $0x40] sm:$0xff]  ;;  %v1161_v32 = vld [vmem:[#allocation2 + $0x38] sm:$0xff] }
 0x314   :  { %v834_v33 = vsel %vm769_vm2, %v831_v30, %v817_v19 }
 0x315   :  { %v840_v38 = vrot.slane %v834_v33, 4  ;;  %v1268_v33 = vld [vmem:[#allocation2 + $0x138] sm:$0xff] }
 0x316   :  { %v819_v35 = vpop.permute.xlu0 %818  ;;  %v821_v40 = vpop.permute.xlu1 %820 }
 0x317   :  { %v835_v36 = vsel %vm769_vm2, %v832_v34, %v819_v35  ;;  %v836_v37 = vsel %vm769_vm2, %v833_v8, %v821_v40  ;;  %v1267_v35 = vld [vmem:[#allocation2 + $0x130] sm:$0xff] }
 0x318   :  { %v841_v41 = vrot.slane %v835_v36, 4  ;;  %v843_v43 = vrot.slane %v836_v37, 4  ;;  %v1266_v37 = vld [vmem:[#allocation2 + $0x128] sm:$0xff] }
 0x31a   :  { %v842_v42 = vsel %vm43_vm3, %v840_v38, %v841_v41  ;;  %v844_v57 = vsel %vm43_vm3, %v841_v41, %v843_v43  ;;  %vm973_vm3 = vcmp.eq.s32.totalorder %v2002_v59, %v965_v53  ;;  %v1173_v59 = vld [vmem:[#allocation2 + $0x98] sm:$0xff]  ;;  %v1265_v43 = vld [vmem:[#allocation2 + $0x120] sm:$0xff] }
 0x31b   :  { %1550 = vmatprep.mubr.msk.f32.mxu0 %vm854_vm14, %v842_v42  ;;  %1574 = vmatpush3.msra.mxu1 %v1173_v59  ;;  %v1264_v42 = vld [vmem:[#allocation2 + $0x118] sm:$0xff] }
 0x31c   :  { %1551 = vmatmul.mubr.msk.f32.gmra.mxu0 %vm854_vm14, %v844_v57  ;;  %1575 = vmatprep.subr.mxu1 %v1739_v60  ;;  %v1263_v57 = vld [vmem:[#allocation2 + $0x110] sm:$0xff] }
 0x31d   :  { %1561 = vmatprep.mubr.msk.f32.mxu0 %vm978_vm15, %v2009_v61  ;;  %v977_v61 = vsel %vm973_vm3, 1.0, %v1739_v60 }
 0x3c1   :  { %v1549_v44 = vpop.f32.mrf.mxu0 }
 0x3c2   :  { %v940_v52 = vadd.f32 %v1549_v44, %v1391_v47  ;;  %v1262_v44 = vld [vmem:[#allocation2 + $0x108] sm:$0xff] }
 0x3c3   :  { %v934_v46 = vpop.f32.mrf.mxu0 }
 0x3c4   :  { %v935_v0 = vadd.f32 %v1391_v47, %v934_v46  ;;  %v1260_v46 = vld [vmem:[#allocation2 + $0xf8] sm:$0xff] }
 0x3dc   :  { %v1552_v16 = vpop.f32.mrf.mxu0 }
 0x3dd   :  { %v950_v48 = vadd.f32 %v1552_v16, %v1391_v47  ;;  %v1258_v16 = vld [vmem:[#allocation2 + $0xe8] sm:$0xff] }
 0x3de   :  { %v944_v50 = vpop.f32.mrf.mxu0 }
 0x3df   :  { %v945_v51 = vadd.f32 %v1391_v47, %v944_v50  ;;  %1553 = vmatprep.subr.mxu0 %v950_v48  ;;  %v1259_v47 = vld [vmem:[#allocation2 + $0xf0] sm:$0xff] }
 0x3e0   :  { %1554 = vmatpush3.msra.mxu0 %v950_v48  ;;  %v1257_v48 = vld [vmem:[#allocation2 + $0xe0] sm:$0xff] }
 0x3e1   :  { %1555 = vmatprep.subr.mxu0 %v945_v51 }
 0x3e2   :  { %1556 = vmatpush3.msra.mxu0 %v945_v51 }
 0x3e3   :  { %1557 = vmatprep.subr.mxu0 %v940_v52 }
 0x3e4   :  { %1558 = vmatpush3.msra.mxu0 %v940_v52 }
 0x3e5   :  { %1559 = vmatprep.subr.mxu0 %v935_v0 }
 0x3e6   :  { %1560 = vmatpush3.msra.mxu0 %v935_v0 }
 0x3e7   :  { %1562 = vmatmul.mubr.msk.f32.vlgmr.msra.gmra.mxu0 %vm978_vm15, %v2027_v39  ;;  %1602 = vmatprep.subr.mxu0 %v1739_v60  ;;  %v1172_v39 = vld [vmem:[#allocation2 + $0x90] sm:$0xff] }
 0x3e8   :  { %1564 = vmatprep.mubr.msk.f32.mxu0 %vm978_vm15, %v2045_v4  ;;  %v1171_v4 = vld [vmem:[#allocation2 + $0x88] sm:$0xff]  ;;  %1576 = vmatpush3.msra.mxu1 %v1172_v39 }
 0x3e9   :  { %1577 = vmatprep.subr.mxu1 %v1739_v60  ;;  %1603 = vmatpush3.msra.mxu0 %v1268_v33  ;;  %v1405_v33 = vld [vmem:[#allocation2 + $0x140] ss:$0 sm:$0xff] }
 0x3ea   :  { %1578 = vmatpush3.msra.mxu1 %v1171_v4  ;;  %1604 = vmatprep.subr.mxu0 %v1739_v60 }
 0x3eb   :  { %1565 = vmatmul.mubr.msk.f32.gmra.mxu0 %vm978_vm15, %v977_v61  ;;  %1579 = vmatprep.subr.mxu1 %v1739_v60 }
 0x3ec   :  { %1580 = vmatpush3.msra.mxu1 %v1170_v55  ;;  %1634 = vmatprep.mubr.msk.f32.mxu0 %vm1746_vm4, %v1739_v60 }
 0x3ed   :  { %1581 = vmatprep.subr.mxu1 %v1739_v60  ;;  %1605 = vmatpush3.msra.mxu0 %v1267_v35 }
 0x3ee   :  { %1582 = vmatpush3.msra.mxu1 %v1169_v56  ;;  %1606 = vmatprep.subr.mxu0 %v1739_v60 }
 0x3ef   :  { %1583 = vmatprep.subr.mxu1 %v1739_v60  ;;  %1607 = vmatpush3.msra.mxu0 %v1266_v37 }
 0x3f0   :  { %1584 = vmatpush3.msra.mxu1 %v1168_v63  ;;  %1608 = vmatprep.subr.mxu0 %v1739_v60 }
 0x3f1   :  { %1585 = vmatprep.subr.mxu1 %v1739_v60  ;;  %1609 = vmatpush3.msra.mxu0 %v1265_v43 }
 0x3f2   :  { %1586 = vmatpush3.msra.mxu1 %v1167_v3  ;;  %1610 = vmatprep.subr.mxu0 %v1739_v60 }
 0x3f3   :  { %1587 = vmatprep.subr.mxu1 %v1739_v60  ;;  %1611 = vmatpush3.msra.mxu0 %v1264_v42 }
 0x3f4   :  { %1588 = vmatpush3.msra.mxu1 %v1166_v12  ;;  %1612 = vmatprep.subr.mxu0 %v1739_v60 }
 0x3f5   :  { %1589 = vmatprep.subr.mxu1 %v1739_v60  ;;  %1613 = vmatpush3.msra.mxu0 %v1263_v57 }
 0x3f6   :  { %1590 = vmatpush3.msra.mxu1 %v1165_v2  ;;  %1614 = vmatprep.subr.mxu0 %v1739_v60 }
 0x3f7   :  { %1591 = vmatprep.subr.mxu1 %v1739_v60  ;;  %1615 = vmatpush3.msra.mxu0 %v1262_v44 }
 0x3f8   :  { %1592 = vmatpush3.msra.mxu1 %v1164_v13  ;;  %1616 = vmatprep.subr.mxu0 %v1739_v60 }
 0x3f9   :  { %1593 = vmatprep.subr.mxu1 %v1739_v60  ;;  %1617 = vmatpush3.msra.mxu0 %v1261_v45 }
 0x3fa   :  { %1594 = vmatpush3.msra.mxu1 %v1163_v22  ;;  %1618 = vmatprep.subr.mxu0 %v1739_v60 }
 0x3fb   :  { %1595 = vmatprep.subr.mxu1 %v1739_v60  ;;  %1619 = vmatpush3.msra.mxu0 %v1260_v46 }
 0x3fc   :  { %1596 = vmatpush3.msra.mxu1 %v1162_v28  ;;  %1620 = vmatprep.subr.mxu0 %v1739_v60  ;;  %v1253_v28 = vld [vmem:[#allocation2 + $0xc0] sm:$0xff] }
 0x3fd   :  { %1597 = vmatprep.subr.mxu1 %v1739_v60  ;;  %1621 = vmatpush3.msra.mxu0 %v1259_v47 }
 0x3fe   :  { %1598 = vmatpush3.msra.mxu1 %v1161_v32  ;;  %1622 = vmatprep.subr.mxu0 %v1739_v60 }
 0x3ff   :  { %1623 = vmatpush3.msra.mxu0 %v1258_v16 }
 0x400   :  { %1624 = vmatprep.subr.mxu0 %v1739_v60 }
 0x401   :  { %1625 = vmatpush3.msra.mxu0 %v1257_v48 }
 0x402   :  { %1626 = vmatprep.subr.mxu0 %v1739_v60 }
 0x403   :  { %1627 = vmatpush3.msra.mxu0 %v1256_v49 }
 0x404   :  { %1628 = vmatprep.subr.mxu0 %v1739_v60 }
 0x4a7   :  { %v1563_v58 = vpop.f32.mrf.mxu0 }
 0x4a9   :  { %v1057_v1 = vpop.f32.mrf.mxu0 }
 0x4ab   :  { %v1566_v62 = vpop.f32.mrf.mxu0 }
 0x4ac   :  { %v1077_v5 = vmax.f32 %v1563_v58, %v1566_v62 }
 0x4ad   :  { %v1067_v6 = vpop.f32.mrf.mxu0 }
 0x4ae   :  { %v2178_v9 = vmax.f32 %v1077_v5, 0.0  ;;  %v1076_v11 = vmax.f32 %v1057_v1, %v1067_v6 }
 0x4b0   :  { %v2181_v7 = vmax.f32 %v1076_v11, 0.0  ;;  %v1126_v15 = vrot.slane %v2178_v9, 2  ;;  %v1122_v19 = vrot.slane %v2178_v9, 1  ;;  %v1134_v26 = vrot.slane %v2178_v9, 4 }
 0x4b1   :  { %v1130_v27 = vrot.slane %v2178_v9, 3  ;;  %v1142_v8 = vrot.slane %v2178_v9, 6  ;;  %v1138_v34 = vrot.slane %v2178_v9, 5  ;;  %v1146_v41 = vrot.slane %v2178_v9, 7 }
 0x4b2   :  { %v1085_v14 = vrot.slane %v2181_v7, 2  ;;  %v1081_v18 = vrot.slane %v2181_v7, 1  ;;  %v1093_v21 = vrot.slane %v2181_v7, 4  ;;  %v1089_v10 = vrot.slane %v2181_v7, 3 }
 0x4b3   :  { %v1101_v23 = vrot.slane %v2181_v7, 6  ;;  %v1097_v31 = vrot.slane %v2181_v7, 5  ;;  %v1105_v38 = vrot.slane %v2181_v7, 7 }
 0x4b4   :  { %v1663_v17 = vpack.i.bf16 %v1085_v14, %v1126_v15  ;;  %v1658_v20 = vpack.i.bf16 %v1081_v18, %v1122_v19  ;;  %v1673_v29 = vpack.i.bf16 %v1093_v21, %v1134_v26  ;;  %v1668_v30 = vpack.i.bf16 %v1089_v10, %v1130_v27  ;;  %v1255_v26 = vld [vmem:[#allocation2 + $0xd0] sm:$0xff]  ;;  %v1254_v27 = vld [vmem:[#allocation2 + $0xc8] sm:$0xff] }
 0x4b5   :  { %v1683_v40 = vpack.i.bf16 %v1101_v23, %v1142_v8  ;;  %v1678_v36 = vpack.i.bf16 %v1097_v31, %v1138_v34  ;;  %1629 = vmatpush3.msra.mxu0 %v1255_v26 }
 0x4b6   :  { %1664 = vrot.lane.b32.xlu1 %v1663_v17, %s1744_s16  ;;  %1659 = vrot.lane.b32.xlu0 %v1658_v20, %s1745_s17 }
 0x4b7   :  { %1630 = vmatprep.subr.mxu0 %v1739_v60 }
 0x4b8   :  { %1631 = vmatpush3.msra.mxu0 %v1254_v27 }
 0x4b9   :  { %1632 = vmatprep.subr.mxu0 %v1739_v60 }
 0x4ba   :  { %1674 = vrot.lane.b32.xlu1 %v1673_v29, %s1747_s18  ;;  %1669 = vrot.lane.b32.xlu0 %v1668_v30, %s1748_s19  ;;  %v1404_v29 = vld [vmem:[#allocation2 + $0xb8] ss:$0 sm:$0xff] }
 0x4bb   :  { %1633 = vmatpush3.msra.mxu0 %v1253_v28 }
 0x4be   :  { %1684 = vrot.lane.b32.xlu1 %v1683_v40, %s1749_s20  ;;  %1679 = vrot.lane.b32.xlu0 %v1678_v36, %s1750_s21 }
 0x4c2   :  { %1106 = vrot.lane.b32.xlu1 %v1105_v38, %s1751_s1  ;;  %1147 = vrot.lane.b32.xlu0 %v1146_v41, %s1751_s1 }
 0x528   :  { %v1665_v50 = vpop.permute.xlu1 %1664  ;;  %v1660_v51 = vpop.permute.xlu0 %1659 }
 0x529   :  { %v1662_v52 = vunpack.i.h.bf16 %v1660_v51  ;;  %v1661_v53 = vunpack.i.l.bf16 %v1660_v51  ;;  %v1667_v0 = vunpack.i.h.bf16 %v1665_v50  ;;  %v1666_v61 = vunpack.i.l.bf16 %v1665_v50 }
 0x52b   :  { %v1110_v24 = vsel %vm1109_vm5, %v2181_v7, %v1662_v52  ;;  %v1150_v54 = vsel %vm1109_vm5, %v2178_v9, %v1661_v53 }
 0x52c   :  { %v1675_v25 = vpop.permute.xlu1 %1674  ;;  %v1670_v59 = vpop.permute.xlu0 %1669  ;;  %v1111_v58 = vsel %vm978_vm15, %v1110_v24, %v1667_v0  ;;  %v1151_v1 = vsel %vm978_vm15, %v1150_v54, %v1666_v61 }
 0x52d   :  { %v1672_v39 = vunpack.i.h.bf16 %v1670_v59  ;;  %v1671_v4 = vunpack.i.l.bf16 %v1670_v59  ;;  %v1677_v55 = vunpack.i.h.bf16 %v1675_v25  ;;  %v1676_v56 = vunpack.i.l.bf16 %v1675_v25 }
 0x52f   :  { %v1113_v62 = vsel %vm1112_vm7, %v1111_v58, %v1672_v39  ;;  %v1152_v63 = vsel %vm1112_vm7, %v1151_v1, %v1671_v4 }
 0x530   :  { %v1685_v3 = vpop.permute.xlu1 %1684  ;;  %v1680_v5 = vpop.permute.xlu0 %1679  ;;  %v1115_v2 = vsel %vm1114_vm8, %v1113_v62, %v1677_v55  ;;  %v1153_v7 = vsel %vm1114_vm8, %v1152_v63, %v1676_v56 }
 0x531   :  { %v1687_v6 = vunpack.i.h.bf16 %v1685_v3  ;;  %v1686_v11 = vunpack.i.l.bf16 %v1685_v3  ;;  %v1682_v9 = vunpack.i.h.bf16 %v1680_v5  ;;  %v1681_v12 = vunpack.i.l.bf16 %v1680_v5 }
 0x533   :  { %v1116_v13 = vsel %vm557_vm13, %v1115_v2, %v1682_v9  ;;  %v1154_v14 = vsel %vm557_vm13, %v1153_v7, %v1681_v12 }
 0x534   :  { %v1107_v15 = vpop.permute.xlu1 %1106  ;;  %v1118_v18 = vsel %vm1117_vm9, %v1116_v13, %v1687_v6  ;;  %v1148_v19 = vpop.permute.xlu0 %1147  ;;  %v1155_v17 = vsel %vm1117_vm9, %v1154_v14, %v1686_v11 }
 0x535   :  { %v1156_v20 = vsel %vm1119_vm10, %v1155_v17, %v1148_v19  ;;  %v1120_v10 = vsel %vm1119_vm10, %v1118_v18, %v1107_v15 }
 0x536   :  { %v1158_v21 = vrot.slane %v1156_v20, 7 }
 0x538   :  { %v1160_v22 = vsel %vm125_vm6, %v1120_v10, %v1158_v21 }
 0x539   :  { %1600 = vmatmul.mubr.f32.vlgmr.msra.gmra.mxu1 %v1160_v22 }
 0x5f9   :  { %v1248_v30 = vpop.f32.mrf.mxu1 }
 0x5fa   :  { %v1249_v23 = vadd.f32 %v1404_v29, %v1248_v30 }
 0x5fb   :  { %v1601_v31 = vpop.f32.mrf.mxu1 }
 0x5fc   :  { %v1252_v32 = vmax.f32 %v1249_v23, 0.0 }
 0x5fe   :  { %1635 = vmatmul.mubr.f32.vlgmr.msra.gmra.mxu0 %v1252_v32 }
 0x6be   :  { %v1340_v8 = vpop.f32.mrf.mxu0 }
 0x6bf   :  { %v1341_v34 = vadd.f32 %v1405_v33, %v1340_v8 }
 0x6c0   :  { %v1636_v35 = vpop.f32.mrf.mxu0 }
 0x6c1   :  { %1344 = vst [vmem:[#allocation5] sm:$0x3] %v1341_v34 }
 0x6c2   :  { %1719 = shalt.err (!%p1716_p9)
}
 0x6c3   :  { %1354 = dma.vmem_to_hbm [thread:$0]  %s1352_s23, 32, %s2231_s2, [#allocation4]  }
 0x6c4   :  { %1730 = dma.done.wait [#allocation4], 32  }
 0x6c5   :  { %1731 = vsyncadd [#allocation4], 4294967264 }
 0x6c6   :  { %1358 = vsyncpa [#allocation3], 1 }
 0x6c7   :  { %1359 = vsyncpa [#allocation4], 1 }

</bundles_post_ra>
